<compile_context>
chip_gen: v7x
topology: tpu7x:2x2x1
jax: 0.10.0
libtpu: 0.0.40
codegen_flags: <defaults>
</compile_context>

<pallas_src>
import jax
import jax.numpy as jnp
from jax.experimental import pallas as pl
from jax.experimental.pallas import tpu as pltpu


def _qvalue_kernel(xa_ref, w1_ref, b1_ref, w2_ref, b2_ref, w3_ref, b3_ref,
                   out_ref):
    # Transposed layout (batch on lanes):
    #   xa_ref : (S+A, TB) bf16   concatenated [x; a], transposed
    #   w1_ref : (H, S+A)  bf16   b1_ref : (H, 1) f32
    #   w2_ref : (H, H)    bf16   b2_ref : (H, 1) f32
    #   w3_ref : (H, 1)    f32    b3_ref : (1, 1) f32
    #   out_ref: (1, TB)   f32
    # fc1: one fused K=(S+A) MXU matmul, bf16 operands, f32 accumulation.
    h1 = jnp.dot(w1_ref[...], xa_ref[...],
                 preferred_element_type=jnp.float32)             # (H, TB) f32
    h1 = jnp.maximum(h1 + b1_ref[...], 0.0)                      # f32 VPU

    # fc2: bf16 operands, f32 accumulation.
    h2 = jnp.dot(w2_ref[...], h1.astype(jnp.bfloat16),
                 preferred_element_type=jnp.float32)             # (H, TB) f32
    h2 = jnp.maximum(h2 + b2_ref[...], 0.0)

    # fc_out (single output row): f32 VPU multiply + sublane (XLU) reduce,
    # lane-dense (1, TB) store.
    q = jnp.sum(h2 * w3_ref[...], axis=0, keepdims=True)         # (1, TB) f32
    out_ref[...] = (q + b3_ref[...]).astype(out_ref.dtype)


def _resident(arr):
    """BlockSpec that keeps a small array resident in VMEM for every step."""
    nd = arr.ndim
    return pl.BlockSpec(arr.shape, lambda i, _nd=nd: (0,) * _nd)


def _round_up(n, m):
    return ((n + m - 1) // m) * m


def qvalue_net_continuous(x, a, params, *, batch_tile=8192):
    """Pallas forward pass of QValueNetContinuous.

    x: (B, state_dim) float; a: (B, action_dim) float
    params: w1 (S+A,H), b1 (1,H), w2 (H,H), b2 (1,H), w3 (H,1), b3 (1,1)
    returns: (B, 1) float32
    """
    x = jnp.asarray(x)
    a = jnp.asarray(a)
    B, S = x.shape
    A = a.shape[1]
    H = params["w2"].shape[0]

    # One small wrapper-side layout op: [x; a]^T as a bf16 (S+A, B) slab so
    # fc1 is a single matmul and the batch axis lands on the lane dimension.
    xa_t = jnp.concatenate([x.T, a.T], axis=0).astype(jnp.bfloat16)

    # Weight packing for the transposed compute (tiny; in a real agent this
    # would be done once after each parameter update).
    w1_t = params["w1"].T.astype(jnp.bfloat16)               # (H, S+A)
    b1 = params["b1"].reshape(H, 1).astype(jnp.float32)
    w2_t = params["w2"].T.astype(jnp.bfloat16)               # (H, H)
    b2 = params["b2"].reshape(H, 1).astype(jnp.float32)
    w3 = params["w3"].reshape(H, 1).astype(jnp.float32)      # kept f32 (VPU/XLU)
    b3 = params["b3"].reshape(1, 1).astype(jnp.float32)

    # Batch tiling.
    tb = batch_tile
    if B <= tb:
        if B >= 256:
            # Keep >= 2 grid steps so the "parallel" batch axis can be
            # sharded across v7x's two TensorCores.
            tb = _round_up(pl.cdiv(B, 2), 128)
        else:
            tb = B                       # single full-array block
    else:
        assert tb % 128 == 0, "batch_tile must be a multiple of 128"
    grid = (pl.cdiv(B, tb),)

    # VMEM budget: double-buffered xa/out blocks + lane-dense f32/bf16
    # temporaries (with 2x margin); clamp to [32 MiB, 48 MiB] so it is safe
    # on v5e/v6e (128 MiB) and leaves headroom under v7x's 64 MiB.
    per_row = (2 * 2 * (S + A)          # xa block, bf16, double-buffered
               + 2 * 4                   # out block, f32, double-buffered
               + 2 * 4 * H               # h1 / h2 f32 temporaries
               + 2 * H                   # bf16 cast of h1
               + 16)                     # q row + slack
    vmem_limit = int(min(max(2 * per_row * tb + (1 << 20), 32 << 20), 48 << 20))

    in_specs = [
        pl.BlockSpec((S + A, tb), lambda i: (0, i)),   # streamed activations
        _resident(w1_t), _resident(b1),
        _resident(w2_t), _resident(b2),
        _resident(w3), _resident(b3),
    ]
    out_specs = pl.BlockSpec((1, tb), lambda i: (0, i))   # lane-dense output

    flops = 2 * B * ((S + A) * H + H * H + H)
    bytes_accessed = (2 * B * (S + A) + 4 * B
                      + 2 * ((S + A) * H + H * H)
                      + 4 * (3 * H + 1))

    out = pl.pallas_call(
        _qvalue_kernel,
        out_shape=jax.ShapeDtypeStruct((1, B), jnp.float32),
        grid=grid,
        in_specs=in_specs,
        out_specs=out_specs,
        compiler_params=pltpu.CompilerParams(
            dimension_semantics=("parallel",),
            vmem_limit_bytes=vmem_limit),
        cost_estimate=pl.CostEstimate(flops=flops, transcendentals=0,
                                      bytes_accessed=bytes_accessed),
    )(xa_t, w1_t, b1, w2_t, b2, w3, b3)

    return out.reshape(B, 1)


def init_params(key, state_dim, hidden_dim, action_dim):
    """Deterministic parameter init (uniform, like torch Linear default range)."""
    ks = jax.random.split(key, 6)
    in1 = state_dim + action_dim

    def unif(k, shape, fan_in):
        bound = 1.0 / jnp.sqrt(fan_in)
        return jax.random.uniform(k, shape, jnp.float32, -bound, bound)

    return {
        # stored as (in_features, out_features); reference does x @ W + b
        "w1": unif(ks[0], (in1, hidden_dim), in1),
        "b1": unif(ks[1], (1, hidden_dim), in1),
        "w2": unif(ks[2], (hidden_dim, hidden_dim), hidden_dim),
        "b2": unif(ks[3], (1, hidden_dim), hidden_dim),
        "w3": unif(ks[4], (hidden_dim, 1), hidden_dim),
        "b3": unif(ks[5], (1, 1), hidden_dim),
    }


def reference_forward(x, a, params):
    cat = jnp.concatenate([x, a], axis=1)
    h1 = jnp.maximum(cat @ params["w1"] + params["b1"], 0.0)
    h2 = jnp.maximum(h1 @ params["w2"] + params["b2"], 0.0)
    return h2 @ params["w3"] + params["b3"]


if __name__ == "__main__":
    state_dim, action_dim, hidden_dim = 12, 4, 32

    key = jax.random.PRNGKey(0)
    kx, ka, kp = jax.random.split(key, 3)
    params = init_params(kp, state_dim, hidden_dim, action_dim)

    def check(batch, **kw):
        x = jax.random.normal(jax.random.fold_in(kx, batch),
                              (batch, state_dim), jnp.float32)
        a = jax.random.normal(jax.random.fold_in(ka, batch),
                              (batch, action_dim), jnp.float32)
        out = jax.block_until_ready(qvalue_net_continuous(x, a, params, **kw))
        ref = reference_forward(x, a, params)
        assert out.shape == (batch, 1), out.shape
        # bf16 matmul operands (f32 accumulation) -> looser tolerance vs f32 ref.
        assert jnp.allclose(out, ref, atol=5e-2, rtol=5e-2), \
            float(jnp.max(jnp.abs(out - ref)))

    # Case 1: tiny batch -> single full-array tile.
    check(8)
    # Case 2: multi-step pipelined grid, resident weights, streamed activations.
    check(512, batch_tile=128)
    # Case 3: ragged batch (B % tile != 0) + >=2-step megacore split path.
    check(300)

    print("KERNEL_OK")
</pallas_src>

<mosaic_0001>
module attributes {stable_mosaic.version = 11 : i64} {
  func.func @_qvalue_kernel(%arg0: i32, %arg1: memref<16x8xbf16, #tpu.memory_space<vmem>>, %arg2: memref<32x16xbf16, #tpu.memory_space<vmem>>, %arg3: memref<32x1xf32, #tpu.memory_space<vmem>>, %arg4: memref<32x32xbf16, #tpu.memory_space<vmem>>, %arg5: memref<32x1xf32, #tpu.memory_space<vmem>>, %arg6: memref<32x1xf32, #tpu.memory_space<vmem>>, %arg7: memref<1x1xf32, #tpu.memory_space<vmem>>, %arg8: memref<1x8xf32, #tpu.memory_space<vmem>>) attributes {dimension_semantics = [#tpu.dimension_semantics<parallel>], iteration_bounds = array<i64: 1>, scalar_prefetch = 0 : i64, scratch_operands = 0 : i64, tpu.core_type = #tpu.core_type<tc>, window_params = [{transform_indices = @transform_0, window_bounds = array<i64: 16, 8>}, {pipeline_mode = #tpu.pipeline_mode<synchronous>, transform_indices = @transform_1, window_bounds = array<i64: 32, 16>}, {pipeline_mode = #tpu.pipeline_mode<synchronous>, transform_indices = @transform_2, window_bounds = array<i64: 32, 1>}, {pipeline_mode = #tpu.pipeline_mode<synchronous>, transform_indices = @transform_3, window_bounds = array<i64: 32, 32>}, {pipeline_mode = #tpu.pipeline_mode<synchronous>, transform_indices = @transform_4, window_bounds = array<i64: 32, 1>}, {pipeline_mode = #tpu.pipeline_mode<synchronous>, transform_indices = @transform_5, window_bounds = array<i64: 32, 1>}, {pipeline_mode = #tpu.pipeline_mode<synchronous>, transform_indices = @transform_6, window_bounds = array<i64: 1, 1>}, {transform_indices = @transform_7, window_bounds = array<i64: 1, 8>}]} {
    %c0 = arith.constant 0 : index
    %c0_0 = arith.constant 0 : index
    %0 = vector.load %arg2[%c0, %c0_0] : memref<32x16xbf16, #tpu.memory_space<vmem>>, vector<32x16xbf16>
    %c0_1 = arith.constant 0 : index
    %c0_2 = arith.constant 0 : index
    %1 = vector.load %arg1[%c0_1, %c0_2] : memref<16x8xbf16, #tpu.memory_space<vmem>>, vector<16x8xbf16>
    %cst = arith.constant dense<0.000000e+00> : vector<32x8xf32>
    %2 = tpu.matmul %0, %1, %cst {dimension_numbers = #tpu.dot_dimension_numbers<[1], [0], [0], [1], [0, 0, 1, 1], [], []>} : vector<32x16xbf16>, vector<16x8xbf16>, vector<32x8xf32> -> vector<32x8xf32>
    %c0_3 = arith.constant 0 : index
    %c0_4 = arith.constant 0 : index
    %3 = vector.load %arg3[%c0_3, %c0_4] : memref<32x1xf32, #tpu.memory_space<vmem>>, vector<32x1xf32>
    %4 = vector.broadcast %3 : vector<32x1xf32> to vector<32x8xf32>
    %5 = arith.addf %2, %4 : vector<32x8xf32>
    %cst_5 = arith.constant 0.000000e+00 : f32
    %6 = vector.broadcast %cst_5 : f32 to vector<32x8xf32>
    %7 = arith.maximumf %5, %6 : vector<32x8xf32>
    %c0_6 = arith.constant 0 : index
    %c0_7 = arith.constant 0 : index
    %8 = vector.load %arg4[%c0_6, %c0_7] : memref<32x32xbf16, #tpu.memory_space<vmem>>, vector<32x32xbf16>
    %9 = arith.truncf %7 : vector<32x8xf32> to vector<32x8xbf16>
    %cst_8 = arith.constant dense<0.000000e+00> : vector<32x8xf32>
    %10 = tpu.matmul %8, %9, %cst_8 {dimension_numbers = #tpu.dot_dimension_numbers<[1], [0], [0], [1], [0, 0, 1, 1], [], []>} : vector<32x32xbf16>, vector<32x8xbf16>, vector<32x8xf32> -> vector<32x8xf32>
    %c0_9 = arith.constant 0 : index
    %c0_10 = arith.constant 0 : index
    %11 = vector.load %arg5[%c0_9, %c0_10] : memref<32x1xf32, #tpu.memory_space<vmem>>, vector<32x1xf32>
    %12 = vector.broadcast %11 : vector<32x1xf32> to vector<32x8xf32>
    %13 = arith.addf %10, %12 : vector<32x8xf32>
    %cst_11 = arith.constant 0.000000e+00 : f32
    %14 = vector.broadcast %cst_11 : f32 to vector<32x8xf32>
    %15 = arith.maximumf %13, %14 : vector<32x8xf32>
    %c0_12 = arith.constant 0 : index
    %c0_13 = arith.constant 0 : index
    %16 = vector.load %arg6[%c0_12, %c0_13] : memref<32x1xf32, #tpu.memory_space<vmem>>, vector<32x1xf32>
    %17 = vector.broadcast %16 : vector<32x1xf32> to vector<32x8xf32>
    %18 = arith.mulf %15, %17 : vector<32x8xf32>
    %cst_14 = arith.constant dense<0.000000e+00> : vector<8xf32>
    %19 = vector.multi_reduction <add>, %18, %cst_14 [0] : vector<32x8xf32> to vector<8xf32>
    %20 = vector.shape_cast %19 : vector<8xf32> to vector<1x8xf32>
    %c0_15 = arith.constant 0 : index
    %c0_16 = arith.constant 0 : index
    %21 = vector.load %arg7[%c0_15, %c0_16] : memref<1x1xf32, #tpu.memory_space<vmem>>, vector<1x1xf32>
    %22 = vector.broadcast %21 : vector<1x1xf32> to vector<1x8xf32>
    %23 = arith.addf %20, %22 : vector<1x8xf32>
    %c0_17 = arith.constant 0 : index
    %c0_18 = arith.constant 0 : index
    %24 = vector.load %arg8[%c0_17, %c0_18] : memref<1x8xf32, #tpu.memory_space<vmem>>, vector<1x8xf32>
    tpu.vector_store %arg8[%c0_17, %c0_18], %23 {strides = array<i32>} : memref<1x8xf32, #tpu.memory_space<vmem>>, vector<1x8xf32>,
    return
  }
  func.func @transform_0(%arg0: i32) -> (i32, i32) {
    %c0_i32 = arith.constant 0 : i32
    %c0_i32_0 = arith.constant 0 : i32
    return %c0_i32, %arg0 : i32, i32
  }
  func.func @transform_1(%arg0: i32) -> (i32, i32) {
    %c0_i32 = arith.constant 0 : i32
    %c0_i32_0 = arith.constant 0 : i32
    %c0_i32_1 = arith.constant 0 : i32
    return %c0_i32, %c0_i32_0 : i32, i32
  }
  func.func @transform_2(%arg0: i32) -> (i32, i32) {
    %c0_i32 = arith.constant 0 : i32
    %c0_i32_0 = arith.constant 0 : i32
    %c0_i32_1 = arith.constant 0 : i32
    return %c0_i32, %c0_i32_0 : i32, i32
  }
  func.func @transform_3(%arg0: i32) -> (i32, i32) {
    %c0_i32 = arith.constant 0 : i32
    %c0_i32_0 = arith.constant 0 : i32
    %c0_i32_1 = arith.constant 0 : i32
    return %c0_i32, %c0_i32_0 : i32, i32
  }
  func.func @transform_4(%arg0: i32) -> (i32, i32) {
    %c0_i32 = arith.constant 0 : i32
    %c0_i32_0 = arith.constant 0 : i32
    %c0_i32_1 = arith.constant 0 : i32
    return %c0_i32, %c0_i32_0 : i32, i32
  }
  func.func @transform_5(%arg0: i32) -> (i32, i32) {
    %c0_i32 = arith.constant 0 : i32
    %c0_i32_0 = arith.constant 0 : i32
    %c0_i32_1 = arith.constant 0 : i32
    return %c0_i32, %c0_i32_0 : i32, i32
  }
  func.func @transform_6(%arg0: i32) -> (i32, i32) {
    %c0_i32 = arith.constant 0 : i32
    %c0_i32_0 = arith.constant 0 : i32
    %c0_i32_1 = arith.constant 0 : i32
    return %c0_i32, %c0_i32_0 : i32, i32
  }
  func.func @transform_7(%arg0: i32) -> (i32, i32) {
    %c0_i32 = arith.constant 0 : i32
    %c0_i32_0 = arith.constant 0 : i32
    return %c0_i32, %arg0 : i32, i32
  }
}

</mosaic_0001>

<bundles_post_ra>
// kernel: tpu_custom_call.1
= control target key start
LH: loop header
LB: loop body
LE: loop exit
PB: predicated region body
PF: predicated region fallthrough
CT: control target
= control target key end

     0   :  { %s478_s0 = inlined_call_operand.vmem [shape: bf16[16,8], index: 0, kind: input, shape index: {}]   ;;  %s479_s1 = inlined_call_operand.vmem [shape: bf16[32,16], index: 1, kind: input, shape index: {}]   ;;  %s480_s2 = inlined_call_operand.vmem [shape: f32[32,1], index: 2, kind: input, shape index: {}]   ;;  %s481_s3 = inlined_call_operand.vmem [shape: bf16[32,32], index: 3, kind: input, shape index: {}]   ;;  %s482_s4 = inlined_call_operand.vmem [shape: f32[32,1], index: 4, kind: input, shape index: {}]   ;;  %s483_s5 = inlined_call_operand.vmem [shape: f32[32,1], index: 5, kind: input, shape index: {}]   ;;  %s484_s6 = inlined_call_operand.<no memory space> [shape: f32[1,1], index: 6, kind: input, shape index: {}]   ;;  %s485_s7 = inlined_call_operand.hbm [shape: f32[1,8], index: 7, kind: output, shape index: {}]  }
   0x1   :  { %v12_v0 = vstv %s484_s6 }
   0x2   :  { %13 = vst [vmem:[#allocation2] sm:$0x1] %v12_v0 }
   0x3   :  { %v339_v1 = vld [vmem:[%s478_s0] sm:$0xff]   ;;  %vm76_vm0 = vcmask 130048   ;;  %v341_v3 = vld [vmem:[%s479_s1 + $0x8] sm:$0xff]   ;;  %v368_v4 = vmov 0   ;;  %v38_v6 = vld [vmem:[%s480_s2 + $0x10] sm:$0xff] }
   0x4   :  { %v340_v2 = vld [vmem:[%s479_s1] sm:$0xff]   ;;  %321 = vmatprep.subr.bf16.mxu0 %v339_v1  ;;  %337 = vset.pattern.permute.xlu0 %v368_v4  ;;  %v37_v7 = vld [vmem:[%s480_s2 + $0x8] sm:$0xff]  ;;  %v39_v8 = vld [vmem:[%s480_s2 + $0x18] sm:$0xff] }
   0x5   :  { %322 = vmatpush3.bf16.msra.mxu0 %v339_v1  ;;  %323 = vmatprep.mubr.msk.bf16.mxu0 %vm76_vm0, %v340_v2  ;;  %v36_v5 = vld [vmem:[%s480_s2] sm:$0xff] }
   0x6   :  { %42 = vperm.xlu0 %337, %v36_v5   ;;  %338 = vset.pattern.permute.xlu1 %v368_v4 }
   0x7   :  { %52 = vperm.xlu1 %338, %v38_v6  }
   0x8   :  { %324 = vmatmul.mubr.msk.bf16.vlgmr.msra.gmra.mrb[0].mxu0 %vm76_vm0, %v341_v3 }
   0xa   :  { %47 = vperm.xlu0 %337, %v37_v7  }
   0xb   :  { %14 = vsyncpa [#allocation4], 0  ;;  %v142_v9 = vld [vmem:[%s482_s4] sm:$0xff]  ;;  %57 = vperm.xlu1 %338, %v39_v8   ;;  %v143_v10 = vld [vmem:[%s482_s4 + $0x8] sm:$0xff]  ;;  %vm176_vm1 = vcmask 261120   ;;  %vm264_vm2 = vcmask 64512   ;;  %v284_v4 = vlaneseq }
   0xc   :  { %v144_v11 = vld [vmem:[%s482_s4 + $0x10] sm:$0xff]  ;;  %v145_v12 = vld [vmem:[%s482_s4 + $0x18] sm:$0xff]  ;;  %v236_v13 = vld [vmem:[%s483_s5] sm:$0xff]  ;;  %vm289_vm3 = vcmask 57344  }
   0xd   :  { %v237_v14 = vld [vmem:[%s483_s5 + $0x8] sm:$0xff]  ;;  %v238_v15 = vld [vmem:[%s483_s5 + $0x10] sm:$0xff]  ;;  %v239_v16 = vld [vmem:[%s483_s5 + $0x18] sm:$0xff]  ;;  %v285_v7 = vshrl.u32 %v284_v4, 7 }
   0xe   :  { %148 = vperm.xlu0 %337, %v142_v9   ;;  %v278_v17 = vld [vmem:[#allocation2] sm:$0x1]  ;;  %v343_v37 = vld [vmem:[%s481_s3 + $0x8] sm:$0xff]  }
   0xf   :  { %153 = vperm.xlu1 %338, %v143_v10   ;;  %v342_v18 = vld [vmem:[%s481_s3] sm:$0xff]   ;;  %v286_v10 = vsub.s32 0, %v285_v7  ;;  %s369_s3 = smov [#allocation3]  }
  0x10   :  { %331 = vmatprep.mubr.msk.bf16.mxu1 %vm176_vm1, %v342_v18  ;;  %s297_s8 = sshll.u32 %s369_s3, 4  ;;  %s298_s8 = int_to_ptr.vmem [resolvable:$true] %s297_s8 }
  0x11   :  { %s344_s6 = scalar_lea.vmem %s298_s8, 16  ;;  %s348_s9 = scalar_lea.vmem %s298_s8, 32 }
  0x12   :  { %158 = vperm.xlu0 %337, %v144_v11   ;;  %p345_p0 = scmp.ne.s32.totalorder %s298_s8, %s344_s6  ;;  %p349_p1 = scmp.lt.s32.totalorder %s298_s8, %s298_s8 }
  0x13   :  { %163 = vperm.xlu1 %338, %v145_v12   ;;  %p350_p2 = scmp.lt.s32.totalorder %s348_s9, %s344_s6 }
  0x15   :  { %p351_p3 = por %p350_p2, %p349_p1 }
  0x16   :  { %242 = vperm.xlu0 %337, %v236_v13  }
  0x17   :  { %247 = vperm.xlu1 %338, %v237_v14   ;;  %p352_p4 = pnand %p351_p3, %p345_p0 }
  0x1a   :  { %252 = vperm.xlu0 %337, %v238_v15  }
  0x1b   :  { %257 = vperm.xlu1 %338, %v239_v16  }
  0x1e   :  { %281 = vperm.xlu0 %337, %v278_v17  }
  0x85   :  { %v43_v20 = vpop.permute.xlu0 %42 }
  0x86   :  { %v53_v19 = vpop.permute.xlu1 %52 }
  0x89   :  { %v48_v27 = vpop.permute.xlu0 %47 }
  0x8a   :  { %v58_v24 = vpop.permute.xlu1 %57 }
  0x8d   :  { %v149_v38 = vpop.permute.xlu0 %148 }
  0x8e   :  { %v154_v39 = vpop.permute.xlu1 %153 }
  0x91   :  { %v159_v40 = vpop.permute.xlu0 %158 }
  0x92   :  { %v164_v41 = vpop.permute.xlu1 %163 }
  0x95   :  { %v243_v43 = vpop.permute.xlu0 %242 }
  0x96   :  { %v248_v48 = vpop.permute.xlu1 %247 }
  0x99   :  { %v253_v57 = vpop.permute.xlu0 %252 }
  0x9a   :  { %v258_v60 = vpop.permute.xlu1 %257 }
  0x9d   :  { %v282_v12 = vpop.permute.xlu0 %281 }
  0x9e   :  { %v287_v14 = vrot.slane %v282_v12, %v286_v10 }
  0xdb   :  { %v325_v21 = vpop.f32.mrb[0].mxu0 }
  0xdc   :  { %v126_v22 = vadd.f32 %v325_v21, %v53_v19  ;;  %v117_v23 = vpop.f32.mrb[1].mxu0 }
  0xdd   :  { %v118_v25 = vadd.f32 %v117_v23, %v43_v20  ;;  %v326_v26 = vpop.f32.mrb[2].mxu0 }
  0xde   :  { %v129_v28 = vadd.f32 %v326_v26, %v58_v24  ;;  %v120_v29 = vpop.f32.mrb[3].mxu0  ;;  %v134_v31 = vmax.f32 %v126_v22, 0.0 }
  0xdf   :  { %v121_v30 = vadd.f32 %v120_v29, %v48_v27  ;;  %v132_v33 = vmax.f32 %v118_v25, 0.0 }
  0xe0   :  { %v135_v32 = vmax.f32 %v129_v28, 0.0 }
  0xe1   :  { %v133_v34 = vmax.f32 %v121_v30, 0.0 }
  0xe2   :  { %v141_v35 = vpack.c.bf16 %v135_v32, %v134_v31 }
  0xe3   :  { %v140_v36 = vpack.c.bf16 %v133_v34, %v132_v33 }
  0xe5   :  { %327 = vmatprep.subr.bf16.mxu1 %v140_v36 }
  0xe6   :  { %328 = vmatpush3.bf16.msra.mxu1 %v140_v36 }
  0xe7   :  { %329 = vmatprep.subr.bf16.mxu1 %v141_v35 }
  0xea   :  { %330 = vmatpush3.bf16.msra.mxu1 %v141_v35 }
  0xed   :  { %332 = vmatmul.mubr.msk.bf16.vlgmr.msra.gmra.mrb[0].mxu1 %vm176_vm1, %v343_v37 }
 0x1c0   :  { %v333_v42 = vpop.f32.mrb[0].mxu1 }
 0x1c1   :  { %v226_v44 = vadd.f32 %v333_v42, %v159_v40  ;;  %v217_v45 = vpop.f32.mrb[1].mxu1 }
 0x1c2   :  { %v218_v46 = vadd.f32 %v217_v45, %v149_v38  ;;  %v334_v47 = vpop.f32.mrb[2].mxu1 }
 0x1c3   :  { %v229_v49 = vadd.f32 %v334_v47, %v164_v41  ;;  %v220_v50 = vpop.f32.mrb[3].mxu1  ;;  %v234_v51 = vmax.f32 %v226_v44, 0.0 }
 0x1c4   :  { %v232_v52 = vmax.f32 %v218_v46, 0.0  ;;  %v221_v53 = vadd.f32 %v220_v50, %v154_v39 }
 0x1c5   :  { %v235_v55 = vmax.f32 %v229_v49, 0.0  ;;  %v262_v58 = vmul.f32 %v253_v57, %v234_v51 }
 0x1c6   :  { %v260_v54 = vmul.f32 %v243_v43, %v232_v52  ;;  %v233_v56 = vmax.f32 %v221_v53, 0.0 }
 0x1c7   :  { %v263_v62 = vmul.f32 %v258_v60, %v235_v55  ;;  %v268_v1 = vsel %vm264_vm2, %v262_v58, 0.0 }
 0x1c8   :  { %v261_v59 = vmul.f32 %v248_v48, %v233_v56  ;;  %v265_v61 = vsel %vm264_vm2, %v260_v54, 0.0 }
 0x1c9   :  { %v270_v3 = vsel %vm264_vm2, %v263_v62, 0.0 }
 0x1ca   :  { %v266_v63 = vsel %vm264_vm2, %v261_v59, 0.0 }
 0x1cb   :  { %v267_v0 = vadd.f32 %v266_v63, %v265_v61 }
 0x1cd   :  { %v269_v2 = vadd.f32 %v268_v1, %v267_v0 }
 0x1cf   :  { %v271_v5 = vadd.f32 %v270_v3, %v269_v2 }
 0x1d1   :  { %v272_v6 = vrot.slane %v271_v5, 4 }
 0x1d3   :  { %v273_v8 = vadd.f32 %v272_v6, %v271_v5 }
 0x1d5   :  { %v274_v9 = vrot.slane %v273_v8, 2 }
 0x1d7   :  { %v275_v11 = vadd.f32 %v274_v9, %v273_v8 }
 0x1d9   :  { %v276_v13 = vrot.slane %v275_v11, 1 }
 0x1db   :  { %v277_v15 = vadd.f32 %v276_v13, %v275_v11 }
 0x1dd   :  { %v288_v16 = vadd.f32 %v287_v14, %v277_v15 }
 0x1df   :  { %290 = vst.msk [vmem:[#allocation3] sm:$0x1] %vm289_vm3, %v288_v16 }
 0x1e0   :  { %355 = shalt.err (!%p352_p4)
}
 0x1e1   :  { %s356_s11 = scalar_lea.hbm %s485_s7, 16 }
 0x1e2   :  { %p357_p5 = scmp.ne.s32.totalorder %s485_s7, %s356_s11  ;;  %p360_p6 = scmp.lt.u32.totalorder %s356_s11, %s485_s7 }
 0x1e4   :  { %p362_p7 = pnand %p360_p6, %p357_p5 }
 0x1e6   :  { %365 = shalt.err (!%p362_p7)
}
 0x1e7   :  { %300 = dma.vmem_to_hbm [thread:$0]  %s298_s8, 16, %s485_s7, [#allocation4]  }
 0x1e8   :  { %366 = dma.done.wait [#allocation4], 16  }
 0x1e9   :  { %367 = vsyncadd [#allocation4], 4294967280 }
 0x1ea   :  { %304 = vsyncpa [#allocation4], 1 }

</bundles_post_ra>
